<compile_context>
chip_gen: v7x
topology: tpu7x:2x2x1
jax: 0.10.0
libtpu: 0.0.40
codegen_flags: <defaults>
</compile_context>

<pallas_src>
import jax
import jax.numpy as jnp
from jax.experimental import pallas as pl
from jax.experimental.pallas import tpu as pltpu

# Small, module-consistent sizes.
B = 2                      # batch
H = W = 16                 # input_size = (16, 16)
PROJ = H * W               # projection_size = H*W = 256
COND = 8                   # condition_size
DIST = 128                 # model_config['distribution_dim']


def _vae_kernel(x_ref, cond_ref, eps_ref,
                wbn_ref, bbn_ref,
                wml_ref, bml_ref,
                z_ref, mean_ref, logstd_ref):
    # ----- encoder -----
    x = x_ref[...]                                                   # (B, PROJ) f32
    # bottle_neck: LazyLinear(PROJ -> COND), f32 accumulation on the MXU.
    h = jnp.dot(x, wbn_ref[...],
                preferred_element_type=jnp.float32) + bbn_ref[...]   # (B, COND)
    # model_config['condition'] == True, condition_type == 'mul'
    h = h * cond_ref[...]                                            # (B, COND)
    # Fused mean / log_std projection: one (COND, 2*DIST) matmul.
    ml = jnp.dot(h, wml_ref[...],
                 preferred_element_type=jnp.float32) + bml_ref[...]  # (B, 2*DIST)
    mean = ml[:, :DIST]                                              # aligned 128-lane split
    log_std = ml[:, DIST:]
    std = jnp.exp(0.5 * log_std)                                     # EUP transcendental
    # Reparameterization + three direct lane-dense stores (no concat temp).
    z_ref[...] = mean + std * eps_ref[...]
    mean_ref[...] = mean
    logstd_ref[...] = log_std
    # NOTE: the reference decoder (projection_layer + reshape + skip-concat)
    # returns None, so its work is dead; it is intentionally NOT computed here.


def init_params(key):
    """Deterministic init mimicking torch.nn.Linear default U(-1/sqrt(fan_in), 1/sqrt(fan_in)).

    Weights are stored (in_features, out_features) in float32 so the kernel
    computes x @ W exactly as the f32 PyTorch Linear layers do. Biases are
    shaped (1, out_features) for clean 2-D broadcasting in VMEM. mean/log_std
    weights are fused along the output dimension into one (COND, 2*DIST) array.
    """
    ks = jax.random.split(key, 6)

    def lin(kw, kb, fan_in, fan_out):
        bound = 1.0 / jnp.sqrt(jnp.float32(fan_in))
        w = jax.random.uniform(kw, (fan_in, fan_out), jnp.float32, -bound, bound)
        b = jax.random.uniform(kb, (1, fan_out), jnp.float32, -bound, bound)
        return w, b

    wbn, bbn = lin(ks[0], ks[1], PROJ, COND)    # bottle_neck
    wm, bm = lin(ks[2], ks[3], COND, DIST)      # mean
    wls, bls = lin(ks[4], ks[5], COND, DIST)    # log_std

    w_ml = jnp.concatenate([wm, wls], axis=1)   # (COND, 2*DIST)
    b_ml = jnp.concatenate([bm, bls], axis=1)   # (1, 2*DIST)

    return wbn, bbn, w_ml, b_ml


@jax.jit
def vae_forward(params, x_nchw, condition, eps):
    """Forward pass. Returns (z, mean, log_std, x) with x = None, matching the reference."""
    wbn, bbn, w_ml, b_ml = params
    b_in = x_nchw.shape[0]

    x_flat = x_nchw.reshape(b_in, -1).astype(jnp.float32)    # torch.flatten(x, 1): (B, PROJ)
    cond = condition.astype(jnp.float32)                     # (B, COND)
    eps = eps.astype(jnp.float32)                            # (B, DIST)

    vmem = pl.BlockSpec(memory_space=pltpu.MemorySpace.VMEM)
    z, mean, log_std = pl.pallas_call(
        _vae_kernel,
        out_shape=(jax.ShapeDtypeStruct((b_in, DIST), jnp.float32),
                   jax.ShapeDtypeStruct((b_in, DIST), jnp.float32),
                   jax.ShapeDtypeStruct((b_in, DIST), jnp.float32)),
        in_specs=[vmem] * 7,
        out_specs=(vmem, vmem, vmem),
    )(x_flat, cond, eps, wbn, bbn, w_ml, b_ml)

    # The reference decoder() ends with `pass` and returns None -> 4th output is None.
    # TODO(synk): if the decoder ever returns its tensor, add the projection_layer
    #   matmul + reshape + skip-concat back into the kernel.
    # TODO(synk): for real training throughput, batch >=128 rows per pallas_call
    #   with a grid over the batch axis marked "parallel" (uses v7x's 2nd TC);
    #   at B=2 the call is purely launch-overhead-bound.
    return z, mean, log_std, None


if __name__ == "__main__":
    key = jax.random.PRNGKey(0)
    k_params, k_x, k_cond, k_eps = jax.random.split(key, 4)

    params = init_params(k_params)

    # Inputs consistent with the module: NCHW image, per-sample condition vector,
    # and the reparameterization noise eps ~ N(0, 1) (randn_like in the reference).
    x = jax.random.uniform(k_x, (B, 1, H, W), jnp.float32)        # "image / 255.0"-like
    condition = jax.random.normal(k_cond, (B, COND), jnp.float32)
    eps = jax.random.normal(k_eps, (B, DIST), jnp.float32)

    z, mean, log_std, x_out = vae_forward(params, x, condition, eps)
    jax.block_until_ready((z, mean, log_std))

    # Pure-JAX reference check (same math, outside Pallas).
    wbn, bbn, w_ml, b_ml = params
    h_ref = (x.reshape(B, -1) @ wbn + bbn) * condition
    ml_ref = h_ref @ w_ml + b_ml
    mean_ref = ml_ref[:, :DIST]
    log_std_ref = ml_ref[:, DIST:]
    z_ref = mean_ref + jnp.exp(0.5 * log_std_ref) * eps
    assert jnp.allclose(z, z_ref, atol=1e-5, rtol=1e-5)
    assert jnp.allclose(mean, mean_ref, atol=1e-5, rtol=1e-5)
    assert jnp.allclose(log_std, log_std_ref, atol=1e-5, rtol=1e-5)

    assert z.shape == (B, DIST) and mean.shape == (B, DIST) and log_std.shape == (B, DIST)
    assert bool(jnp.all(jnp.isfinite(z)))
    assert x_out is None  # matches the reference forward (decoder returns None)
    print("KERNEL_OK")
</pallas_src>

<mosaic_0001>
module attributes {stable_mosaic.version = 11 : i64} {
  func.func @_vae_kernel(%arg0: memref<2x256xf32, #tpu.memory_space<vmem>>, %arg1: memref<2x8xf32, #tpu.memory_space<vmem>>, %arg2: memref<2x128xf32, #tpu.memory_space<vmem>>, %arg3: memref<256x8xf32, #tpu.memory_space<vmem>>, %arg4: memref<1x8xf32, #tpu.memory_space<vmem>>, %arg5: memref<8x256xf32, #tpu.memory_space<vmem>>, %arg6: memref<1x256xf32, #tpu.memory_space<vmem>>, %arg7: memref<2x128xf32, #tpu.memory_space<vmem>>, %arg8: memref<2x128xf32, #tpu.memory_space<vmem>>, %arg9: memref<2x128xf32, #tpu.memory_space<vmem>>) attributes {dimension_semantics = [], scalar_prefetch = 0 : i64, scratch_operands = 0 : i64, tpu.core_type = #tpu.core_type<tc>} {
    %c0 = arith.constant 0 : index
    %c0_0 = arith.constant 0 : index
    %0 = vector.load %arg0[%c0, %c0_0] : memref<2x256xf32, #tpu.memory_space<vmem>>, vector<2x256xf32>
    %c0_1 = arith.constant 0 : index
    %c0_2 = arith.constant 0 : index
    %1 = vector.load %arg3[%c0_1, %c0_2] : memref<256x8xf32, #tpu.memory_space<vmem>>, vector<256x8xf32>
    %cst = arith.constant dense<0.000000e+00> : vector<2x8xf32>
    %2 = tpu.matmul %0, %1, %cst {dimension_numbers = #tpu.dot_dimension_numbers<[1], [0], [0], [1], [0, 0, 1, 1], [], []>} : vector<2x256xf32>, vector<256x8xf32>, vector<2x8xf32> -> vector<2x8xf32>
    %c0_3 = arith.constant 0 : index
    %c0_4 = arith.constant 0 : index
    %3 = vector.load %arg4[%c0_3, %c0_4] : memref<1x8xf32, #tpu.memory_space<vmem>>, vector<1x8xf32>
    %4 = vector.broadcast %3 : vector<1x8xf32> to vector<2x8xf32>
    %5 = arith.addf %2, %4 : vector<2x8xf32>
    %c0_5 = arith.constant 0 : index
    %c0_6 = arith.constant 0 : index
    %6 = vector.load %arg1[%c0_5, %c0_6] : memref<2x8xf32, #tpu.memory_space<vmem>>, vector<2x8xf32>
    %7 = arith.mulf %5, %6 : vector<2x8xf32>
    %c0_7 = arith.constant 0 : index
    %c0_8 = arith.constant 0 : index
    %8 = vector.load %arg5[%c0_7, %c0_8] : memref<8x256xf32, #tpu.memory_space<vmem>>, vector<8x256xf32>
    %cst_9 = arith.constant dense<0.000000e+00> : vector<2x256xf32>
    %9 = tpu.matmul %7, %8, %cst_9 {dimension_numbers = #tpu.dot_dimension_numbers<[1], [0], [0], [1], [0, 0, 1, 1], [], []>} : vector<2x8xf32>, vector<8x256xf32>, vector<2x256xf32> -> vector<2x256xf32>
    %c0_10 = arith.constant 0 : index
    %c0_11 = arith.constant 0 : index
    %10 = vector.load %arg6[%c0_10, %c0_11] : memref<1x256xf32, #tpu.memory_space<vmem>>, vector<1x256xf32>
    %11 = vector.broadcast %10 : vector<1x256xf32> to vector<2x256xf32>
    %12 = arith.addf %9, %11 : vector<2x256xf32>
    %13 = vector.extract_strided_slice %12 {offsets = [0, 0], sizes = [2, 128], strides = [1, 1]} : vector<2x256xf32> to vector<2x128xf32>
    %14 = vector.extract_strided_slice %12 {offsets = [0, 128], sizes = [2, 128], strides = [1, 1]} : vector<2x256xf32> to vector<2x128xf32>
    %cst_12 = arith.constant 5.000000e-01 : f32
    %15 = vector.broadcast %cst_12 : f32 to vector<2x128xf32>
    %16 = arith.mulf %15, %14 : vector<2x128xf32>
    %17 = math.exp %16 : vector<2x128xf32>
    %c0_13 = arith.constant 0 : index
    %c0_14 = arith.constant 0 : index
    %18 = vector.load %arg2[%c0_13, %c0_14] : memref<2x128xf32, #tpu.memory_space<vmem>>, vector<2x128xf32>
    %19 = arith.mulf %17, %18 : vector<2x128xf32>
    %20 = arith.addf %13, %19 : vector<2x128xf32>
    %c0_15 = arith.constant 0 : index
    %c0_16 = arith.constant 0 : index
    %21 = vector.load %arg7[%c0_15, %c0_16] : memref<2x128xf32, #tpu.memory_space<vmem>>, vector<2x128xf32>
    tpu.vector_store %arg7[%c0_15, %c0_16], %20 {strides = array<i32>} : memref<2x128xf32, #tpu.memory_space<vmem>>, vector<2x128xf32>,
    %c0_17 = arith.constant 0 : index
    %c0_18 = arith.constant 0 : index
    %22 = vector.load %arg8[%c0_17, %c0_18] : memref<2x128xf32, #tpu.memory_space<vmem>>, vector<2x128xf32>
    tpu.vector_store %arg8[%c0_17, %c0_18], %13 {strides = array<i32>} : memref<2x128xf32, #tpu.memory_space<vmem>>, vector<2x128xf32>,
    %c0_19 = arith.constant 0 : index
    %c0_20 = arith.constant 0 : index
    %23 = vector.load %arg9[%c0_19, %c0_20] : memref<2x128xf32, #tpu.memory_space<vmem>>, vector<2x128xf32>
    tpu.vector_store %arg9[%c0_19, %c0_20], %14 {strides = array<i32>} : memref<2x128xf32, #tpu.memory_space<vmem>>, vector<2x128xf32>,
    return
  }
}

</mosaic_0001>

<bundles_post_ra>
// kernel: vae_forward.1
= control target key start
LH: loop header
LB: loop body
LE: loop exit
PB: predicated region body
PF: predicated region fallthrough
CT: control target
= control target key end

     0   :  { %15 = vsyncpa [#allocation3], 0  ;;  %s653_s0 = inlined_call_operand.vmem [shape: f32[2,256], index: 0, kind: input, shape index: {}]   ;;  %s654_s1 = inlined_call_operand.vmem [shape: f32[2,8], index: 1, kind: input, shape index: {}]   ;;  %s655_s2 = inlined_call_operand.vmem [shape: f32[2,128], index: 2, kind: input, shape index: {}]   ;;  %s656_s3 = inlined_call_operand.vmem [shape: f32[256,8], index: 3, kind: input, shape index: {}]   ;;  %s657_s4 = inlined_call_operand.vmem [shape: f32[1,8], index: 4, kind: input, shape index: {}]   ;;  %s658_s5 = inlined_call_operand.vmem [shape: f32[8,256], index: 5, kind: input, shape index: {}]   ;;  %s659_s6 = inlined_call_operand.vmem [shape: f32[1,256], index: 6, kind: input, shape index: {}]   ;;  %s660_s7 = inlined_call_operand.hbm [shape: f32[2,128], index: 7, kind: output, shape index: {0}]   ;;  %s661_s8 = inlined_call_operand.hbm [shape: f32[2,128], index: 8, kind: output, shape index: {1}]   ;;  %s662_s9 = inlined_call_operand.hbm [shape: f32[2,128], index: 9, kind: output, shape index: {2}]  }
   0x1   :  { %v48_v0 = vld [vmem:[%s656_s3 + $0x80] sm:$0xff]  ;;  %v49_v1 = vld [vmem:[%s656_s3 + $0x88] sm:$0xff]  ;;  %v50_v5 = vld [vmem:[%s656_s3 + $0x90] sm:$0xff] }
   0x2   :  { %v32_v2 = vld [vmem:[%s656_s3] sm:$0xff]  ;;  %v331_v3 = vpack.c.bf16 %v49_v1, %v48_v0  ;;  %v33_v4 = vld [vmem:[%s656_s3 + $0x8] sm:$0xff]  ;;  %v51_v6 = vld [vmem:[%s656_s3 + $0x98] sm:$0xff] }
   0x3   :  { %v333_v7 = vpack.c.bf16 %v33_v4, %v32_v2  ;;  %v335_v8 = vpack.c.bf16 %v51_v6, %v50_v5  ;;  %v34_v9 = vld [vmem:[%s656_s3 + $0x10] sm:$0xff]  ;;  %v35_v10 = vld [vmem:[%s656_s3 + $0x18] sm:$0xff]  ;;  %v52_v11 = vld [vmem:[%s656_s3 + $0xa0] sm:$0xff] }
   0x4   :  { %332 = vmatprep.subr.bf16.mxu0 %v331_v3  ;;  %v53_v12 = vld [vmem:[%s656_s3 + $0xa8] sm:$0xff]  ;;  %v337_v13 = vpack.c.bf16 %v35_v10, %v34_v9  ;;  %v36_v15 = vld [vmem:[%s656_s3 + $0x20] sm:$0xff]  ;;  %v54_v17 = vld [vmem:[%s656_s3 + $0xb0] sm:$0xff] }
   0x5   :  { %334 = vmatpush3.bf16.msra.mxu0 %v333_v7  ;;  %v339_v14 = vpack.c.bf16 %v53_v12, %v52_v11  ;;  %v37_v16 = vld [vmem:[%s656_s3 + $0x28] sm:$0xff]  ;;  %v55_v18 = vld [vmem:[%s656_s3 + $0xb8] sm:$0xff]  ;;  %v38_v21 = vld [vmem:[%s656_s3 + $0x30] sm:$0xff] }
   0x6   :  { %336 = vmatprep.subr.bf16.mxu0 %v335_v8  ;;  %v341_v19 = vpack.c.bf16 %v37_v16, %v36_v15  ;;  %v343_v20 = vpack.c.bf16 %v55_v18, %v54_v17  ;;  %v39_v22 = vld [vmem:[%s656_s3 + $0x38] sm:$0xff]  ;;  %v56_v23 = vld [vmem:[%s656_s3 + $0xc0] sm:$0xff]  ;;  %v57_v24 = vld [vmem:[%s656_s3 + $0xc8] sm:$0xff] }
   0x7   :  { %v294_v25 = vld.sshfl [vmem:[%s653_s0] sm:$0x33 pattern:$0x76325410] }
   0x8   :  { %v79_v26 = vcombine.high %v294_v25, %v294_v25 }
   0x9   :  { %338 = vmatpush3.bf16.msra.mxu0 %v337_v13 }
   0xa   :  { %340 = vmatprep.subr.bf16.mxu0 %v339_v14 }
   0xb   :  { %16 = vsyncpa [#allocation5], 0  ;;  %v345_v27 = vpack.c.bf16 %v39_v22, %v38_v21  ;;  %v347_v28 = vpack.c.bf16 %v57_v24, %v56_v23  ;;  %v40_v29 = vld [vmem:[%s656_s3 + $0x40] sm:$0xff]  ;;  %v41_v30 = vld [vmem:[%s656_s3 + $0x48] sm:$0xff]  ;;  %146 = vmatprep.mubr.f32.mxu0 %v79_v26  ;;  %v439_v52 = vmov 0.0   ;;  %vm168_vm0 = vcmask 64512  }
   0xc   :  { %v58_v31 = vld [vmem:[%s656_s3 + $0xd0] sm:$0xff]  ;;  %v59_v32 = vld [vmem:[%s656_s3 + $0xd8] sm:$0xff]  ;;  %v349_v33 = vpack.c.bf16 %v41_v30, %v40_v29  ;;  %v60_v37 = vld [vmem:[%s656_s3 + $0xe0] sm:$0xff]  ;;  %236 = vmatprep.mubr.f32.mxu1 %v439_v52  ;;  %v158_v60 = vlaneseq  ;;  %s441_s19 = smov [#allocation6]  }
   0xd   :  { %342 = vmatpush3.bf16.msra.mxu0 %v341_v19  ;;  %v351_v34 = vpack.c.bf16 %v59_v32, %v58_v31  ;;  %v42_v35 = vld [vmem:[%s656_s3 + $0x50] sm:$0xff]  ;;  %v43_v36 = vld [vmem:[%s656_s3 + $0x58] sm:$0xff]  ;;  %v61_v38 = vld [vmem:[%s656_s3 + $0xe8] sm:$0xff]  ;;  %s278_s20 = sshll.u32 %s441_s19, 4  ;;  %s607_s20 = int_to_ptr.vmem [resolvable:$true] %s278_s20 }
   0xe   :  { %344 = vmatprep.subr.bf16.mxu0 %v343_v20  ;;  %v353_v39 = vpack.c.bf16 %v43_v36, %v42_v35  ;;  %v355_v40 = vpack.c.bf16 %v61_v38, %v60_v37  ;;  %v44_v41 = vld [vmem:[%s656_s3 + $0x60] sm:$0xff]  ;;  %v45_v42 = vld [vmem:[%s656_s3 + $0x68] sm:$0xff]  ;;  %v62_v43 = vld [vmem:[%s656_s3 + $0xf0] sm:$0xff]  ;;  %v159_v61 = vshrl.u32 %v158_v60, 7 }
   0xf   :  { %v63_v44 = vld [vmem:[%s656_s3 + $0xf8] sm:$0xff]  ;;  %v357_v45 = vpack.c.bf16 %v45_v42, %v44_v41  ;;  %v46_v47 = vld [vmem:[%s656_s3 + $0x70] sm:$0xff]  ;;  %v155_v50 = vld [vmem:[%s658_s5 + $0x8] sm:$0xff] }
  0x10   :  { %v359_v46 = vpack.c.bf16 %v63_v44, %v62_v43  ;;  %v47_v48 = vld [vmem:[%s656_s3 + $0x78] sm:$0xff]  ;;  %172 = vmatprep.subr.mxu1 %v155_v50  ;;  %v154_v51 = vld [vmem:[%s658_s5] sm:$0xff]  ;;  %v160_v62 = vsub.s32 0, %v159_v61  ;;  %v164_v0 = vsub.s32 1, %v159_v61 }
  0x11   :  { %346 = vmatpush3.bf16.msra.mxu0 %v345_v27  ;;  %v361_v49 = vpack.c.bf16 %v47_v48, %v46_v47  ;;  %173 = vmatpush1.msra.mxu1 %v154_v51  ;;  %v293_v54 = vld [vmem:[%s657_s4] ss:$0 sm:$0xff]  ;;  %s440_s4 = smov [#allocation4]  }
  0x12   :  { %348 = vmatprep.subr.bf16.mxu0 %v347_v28  ;;  %v152_v57 = vld [vmem:[%s654_s1] sm:$0x3]  ;;  %s268_s18 = sshll.u32 %s440_s4, 4  ;;  %s269_s18 = int_to_ptr.vmem [resolvable:$true] %s268_s18 }
  0x13   :  { %v156_v63 = vld [vmem:[%s659_s6] sm:$0x3]  ;;  %s369_s1 = scalar_lea.vmem %s269_s18, 32  ;;  %p374_p1 = scmp.lt.s32.totalorder %s269_s18, %s269_s18 }
  0x14   :  { %v161_v1 = vrot.slane %v156_v63, %v160_v62  ;;  %v165_v2 = vrot.slane %v156_v63, %v164_v0  ;;  %p370_p0 = scmp.ne.s32.totalorder %s269_s18, %s369_s1  ;;  %p375_p2 = scmp.lt.s32.totalorder %s369_s1, %s369_s1 }
  0x15   :  { %350 = vmatpush3.bf16.msra.mxu0 %v349_v33 }
  0x16   :  { %352 = vmatprep.subr.bf16.mxu0 %v351_v34  ;;  %p376_p3 = por %p375_p2, %p374_p1 }
  0x18   :  { %p377_p4 = pnand %p376_p3, %p370_p0 }
  0x19   :  { %354 = vmatpush3.bf16.msra.mxu0 %v353_v39 }
  0x1a   :  { %356 = vmatprep.subr.bf16.mxu0 %v355_v40 }
  0x1d   :  { %358 = vmatpush3.bf16.msra.mxu0 %v357_v45 }
  0x1e   :  { %360 = vmatprep.subr.bf16.mxu0 %v359_v46 }
  0x21   :  { %362 = vmatpush3.bf16.msra.mxu0 %v361_v49 }
  0x24   :  { %147 = vmatmul.mubr.f32.vlgmr.msra.gmra.mrb[0].mxu0 %v294_v25 }
  0xf7   :  { %v328_v53 = vpop.f32.mrb[0].mxu0 }
  0xf8   :  { %v329_v55 = vpop.f32.mrb[1].mxu0 }
  0xf9   :  { %v330_v56 = vadd.f32 %v329_v55, %v328_v53 }
  0xfb   :  { %v149_v58 = vadd.f32 %v330_v56, %v293_v54 }
  0xfd   :  { %v153_v59 = vmul.f32 %v152_v57, %v149_v58 }
  0xff   :  { %295 = vmatmul.mubr.msk.f32.vlgmr.msra.gmra.mrb[0].mxu1 %vm168_vm0, %v153_v59 }
 0x1d2   :  { %v238_v3 = vpop.f32.mrb[0].mxu1 }
 0x1d3   :  { %v239_v4 = vadd.f32 %v238_v3, %v161_v1  ;;  %v240_v5 = vpop.f32.mrb[1].mxu1 }
 0x1d4   :  { %v241_v6 = vadd.f32 %v240_v5, %v165_v2 }
 0x1d5   :  { %250 = vst [vmem:[#allocation4] sm:$0x3] %v239_v4 }
 0x1d6   :  { %v243_v7 = vmul.f32 0.5, %v241_v6  ;;  %251 = vst [vmem:[#allocation6] sm:$0x3] %v241_v6 }
 0x1d7   :  { %380 = shalt.err (!%p377_p4)
}
 0x1d8   :  { %s381_s22 = scalar_lea.hbm %s661_s8, 32 }
 0x1d9   :  { %p382_p5 = scmp.ne.s32.totalorder %s661_s8, %s381_s22  ;;  %p385_p6 = scmp.lt.u32.totalorder %s381_s22, %s661_s8 }
 0x1db   :  { %p387_p7 = pnand %p385_p6, %p382_p5 }
 0x1dd   :  { %390 = shalt.err (!%p387_p7)
}
 0x1de   :  { %271 = dma.vmem_to_hbm [thread:$0]  %s269_s18, 32, %s661_s8, [#allocation5]  }
 0x1df   :  { %s391_s29 = scalar_lea.vmem %s607_s20, 32  ;;  %p396_p9 = scmp.lt.s32.totalorder %s607_s20, %s607_s20 }
 0x1e0   :  { %p392_p8 = scmp.ne.s32.totalorder %s607_s20, %s391_s29  ;;  %p397_p10 = scmp.lt.s32.totalorder %s391_s29, %s391_s29 }
 0x1e2   :  { %p398_p11 = por %p397_p10, %p396_p9 }
 0x1e4   :  { %p399_p12 = pnand %p398_p11, %p392_p8 }
 0x1e6   :  { %402 = shalt.err (!%p399_p12)
}
 0x1e7   :  { %s403_s0 = scalar_lea.hbm %s662_s9, 32 }
 0x1e8   :  { %p404_p13 = scmp.ne.s32.totalorder %s662_s9, %s403_s0  ;;  %p407_p0 = scmp.lt.u32.totalorder %s403_s0, %s662_s9 }
 0x1ea   :  { %p409_p1 = pnand %p407_p0, %p404_p13 }
 0x1ec   :  { %412 = shalt.err (!%p409_p1)
}
 0x1ed   :  { %281 = dma.vmem_to_hbm [thread:$0]  %s607_s20, 32, %s662_s9, [#allocation5]   ;;  %v244_v8 = vmul.f32 1.442695, %v243_v7  ;;  %v246_v9 = vld [vmem:[%s655_s2] sm:$0x3] }
 0x1ee   :  { %s442_s5 = smov [#allocation2]  }
 0x1ef   :  { %367 = vpow2.f32 %v244_v8  ;;  %s258_s17 = sshll.u32 %s442_s5, 4  ;;  %s259_s17 = int_to_ptr.vmem [resolvable:$true] %s258_s17 }
 0x1f0   :  { %s413_s4 = scalar_lea.vmem %s259_s17, 32  ;;  %p418_p3 = scmp.lt.s32.totalorder %s259_s17, %s259_s17 }
 0x1f1   :  { %p414_p2 = scmp.ne.s32.totalorder %s259_s17, %s413_s4  ;;  %p419_p4 = scmp.lt.s32.totalorder %s413_s4, %s413_s4 }
 0x1f3   :  { %p420_p5 = por %p419_p4, %p418_p3 }
 0x1f5   :  { %p421_p6 = pnand %p420_p5, %p414_p2 }
 0x1f9   :  { %v368_v10 = vpop.eup %367 }
 0x1fa   :  { %v247_v11 = vmul.f32 %v368_v10, %v246_v9 }
 0x1fc   :  { %v248_v12 = vadd.f32 %v247_v11, %v239_v4 }
 0x1fe   :  { %249 = vst [vmem:[#allocation2] sm:$0x3] %v248_v12 }
 0x1ff   :  { %424 = shalt.err (!%p421_p6)
}
 0x200   :  { %s425_s19 = scalar_lea.hbm %s660_s7, 32 }
 0x201   :  { %p426_p7 = scmp.ne.s32.totalorder %s660_s7, %s425_s19  ;;  %p429_p8 = scmp.lt.u32.totalorder %s425_s19, %s660_s7 }
 0x203   :  { %p431_p9 = pnand %p429_p8, %p426_p7 }
 0x205   :  { %434 = shalt.err (!%p431_p9)
}
 0x206   :  { %261 = dma.vmem_to_hbm [thread:$0]  %s259_s17, 32, %s660_s7, [#allocation3]  }
 0x207   :  { %435 = dma.done.wait [#allocation3], 32  }
 0x208   :  { %436 = vsyncadd [#allocation3], 4294967264 }
 0x209   :  { %437 = dma.done.wait [#allocation5], 64  }
 0x20a   :  { %438 = vsyncadd [#allocation5], 4294967232 }
 0x20b   :  { %291 = vsyncpa [#allocation3], 1 }
 0x20c   :  { %292 = vsyncpa [#allocation5], 1 }

</bundles_post_ra>
